<compile_context>
chip_gen: v7x
topology: tpu7x:2x2x1
jax: 0.10.0
libtpu: 0.0.40
codegen_flags: <defaults>
</compile_context>

<pallas_src>
import functools
from numbers import Number

import jax
import jax.numpy as jnp
from jax.experimental import pallas as pl
from jax.experimental.pallas import tpu as pltpu


def _round_up(n, m):
    return ((n + m - 1) // m) * m


def _apply_act(h, act, slope):
    if act == "lrelu":
        return jnp.where(h >= 0, h, slope * h)
    if act == "xtanh":
        return jnp.tanh(h) + slope * h
    if act == "sigmoid":
        return jax.nn.sigmoid(h)
    if act == "none":
        return h
    raise ValueError(f"Incorrect activation: {act}")


# ----------------------------- Pallas kernel --------------------------------
def _ivae_fused_kernel(in_ref, wl_ref, bl_ref, wgv_ref, bgv_ref, wf_ref, bf_ref,
                       out_ref, *, acts, slope, n_layers, latent_dim, data_dim):
    """One batch tile of the full iVAE forward, entirely in VMEM/vregs.

    Packed input lanes (bf16):  [ eps(L) | x(D) | u(A) | zeros ]
    Packed output lanes (f32):  [ f(D) | g(L) | v(L) | z(L) | lam(L) | zeros ]
    """
    L, D = latent_dim, data_dim
    h_in = in_ref[...]                       # (tm, P) bf16
    tm, P = h_in.shape

    def mlp(h, w_ref, b_ref):
        # Unrolled layer loop; bf16 MXU operands, f32 accumulation.
        for c in range(n_layers):
            h32 = jnp.dot(h, w_ref[c],
                          preferred_element_type=jnp.float32) + b_ref[c]
            if c != n_layers - 1:
                h = _apply_act(h32, acts[c], slope).astype(jnp.bfloat16)
            else:
                h = h32                      # final layer stays f32
        return h

    lane = jax.lax.broadcasted_iota(jnp.int32, (tm, P), 1)
    lat_mask = lane < L

    # prior variance: lambda = exp(logl(u)).  logl layer-0 rows sit at u's lane
    # offset in the packed input, so it is fed directly (eps/x lanes hit zero
    # weight rows).
    lam = jnp.where(lat_mask, jnp.exp(mlp(h_in, wl_ref, bl_ref)), 0.0)

    # fused encoder (g and logv stacked lane-wise / block-diagonal):
    # output lanes [0:L] = g, [L:2L] = logv, rest exactly zero.
    gv = mlp(h_in, wgv_ref, bgv_ref)
    g = jnp.where(lat_mask, gv, 0.0)
    v = jnp.where(lat_mask, jnp.exp(pltpu.roll(gv, P - L, axis=1)), 0.0)

    # reparameterized sample: z = g + eps * sqrt(v)   (eps is in lanes [0:L])
    eps = jnp.where(lat_mask, h_in.astype(jnp.float32), 0.0)
    z = g + eps * jnp.sqrt(v)

    # decoder mean f(z); z's zero pad lanes hit zero weight rows of wf.
    f = mlp(z.astype(jnp.bfloat16), wf_ref, bf_ref)   # exact zeros beyond D

    # Pack [f | g | v | z | lam] into one lane-dense slab -> a single unmasked
    # full-width store (5x less output HBM traffic).  Supports never overlap
    # because D + 4L <= P by construction; wrapped lanes are zeros.
    packed = (f
              + pltpu.roll(g, D, axis=1)
              + pltpu.roll(v, D + L, axis=1)
              + pltpu.roll(z, D + 2 * L, axis=1)
              + pltpu.roll(lam, D + 3 * L, axis=1))
    if out_ref.shape[1] == P:
        out_ref[...] = packed
    else:
        out_ref[...] = packed[:, :out_ref.shape[1]]


# ----------------------------- forward wrapper -------------------------------
def _ivae_forward(params, x, u, eps, *, latent_dim, data_dim, aux_dim,
                  n_layers, acts, slope, P, P_out):
    L, D, A = latent_dim, data_dim, aux_dim
    batch = x.shape[0]
    b_pad = _round_up(batch, 8)              # pad rows to a multiple of 8 only

    # Batch tile: large (amortizes per-grid-step overhead, keeps DMAs near the
    # HBM roofline) but capped so tiles + intermediates fit scoped VMEM on all
    # of v5e/v6e/v7x; batches >= 1024 are split into >= 2 tiles so the
    # "parallel" axis shards across v7x's two TensorCores.
    tm = min(1024, b_pad)
    if b_pad >= 1024:
        tm = min(tm, _round_up(pl.cdiv(b_pad, 2), 8))
    grid = pl.cdiv(b_pad, tm)                # last block may be partial

    # Single packed bf16 input slab [eps | x | u | 0-pad].
    packed_in = jnp.concatenate(
        [eps.astype(jnp.float32), x.astype(jnp.float32), u.astype(jnp.float32)],
        axis=1).astype(jnp.bfloat16)
    packed_in = jnp.pad(packed_in, ((0, b_pad - batch), (0, P - (L + D + A))))

    kernel = functools.partial(_ivae_fused_kernel, acts=acts, slope=slope,
                               n_layers=n_layers, latent_dim=L, data_dim=D)

    in_spec = pl.BlockSpec((tm, P), lambda i: (i, 0))
    out_spec = pl.BlockSpec((tm, P_out), lambda i: (i, 0))
    w_spec = pl.BlockSpec((n_layers, P, P), lambda i: (0, 0, 0))
    b_spec = pl.BlockSpec((n_layers, 1, P), lambda i: (0, 0, 0))

    out = pl.pallas_call(
        kernel,
        out_shape=jax.ShapeDtypeStruct((b_pad, P_out), jnp.float32),
        grid_spec=pltpu.PrefetchScalarGridSpec(
            num_scalar_prefetch=0,
            grid=(grid,),
            in_specs=[in_spec, w_spec, b_spec, w_spec, b_spec, w_spec, b_spec],
            out_specs=out_spec,
        ),
        compiler_params=pltpu.CompilerParams(
            dimension_semantics=("parallel",),
            vmem_limit_bytes=32 * 1024 * 1024),
    )(packed_in, params["wl"], params["bl"], params["wgv"], params["bgv"],
      params["wf"], params["bf"])

    f = out[:batch, 0:D]
    g = out[:batch, D:D + L]
    v = out[:batch, D + L:D + 2 * L]
    z = out[:batch, D + 2 * L:D + 3 * L]
    lam = out[:batch, D + 3 * L:D + 4 * L]
    return f, g, v, z, lam


# ----------------------------- parameter setup -------------------------------
def _mlp_layer_dims(input_dim, output_dim, hidden_dim, n_layers):
    if isinstance(hidden_dim, Number):
        hidden = [hidden_dim] * (n_layers - 1)
    elif isinstance(hidden_dim, list):
        hidden = hidden_dim
    else:
        raise ValueError(f"Wrong argument type for hidden_dim: {hidden_dim}")
    if n_layers == 1:
        return [(input_dim, output_dim)]
    dims = [(input_dim, hidden[0])]
    for i in range(1, n_layers - 1):
        dims.append((hidden[i - 1], hidden[i]))
    dims.append((hidden[n_layers - 2], output_dim))
    return dims


def _init_mlp_params(key, dims):
    # Weights: Xavier-uniform (mirrors weights_init); biases: torch Linear default.
    # Stored as (in_dim, out_dim) so the hot path is h @ W.
    Ws, bs = [], []
    for (din, dout) in dims:
        key, kw, kb = jax.random.split(key, 3)
        wb = (6.0 / (din + dout)) ** 0.5
        bb = 1.0 / (din ** 0.5)
        Ws.append(jax.random.uniform(kw, (din, dout), jnp.float32, -wb, wb))
        bs.append(jax.random.uniform(kb, (dout,), jnp.float32, -bb, bb))
    return key, Ws, bs


def _stack_padded(Ws, bs, P, row_offset=0):
    """Stack per-layer weights into (L,P,P) bf16 / biases into (L,1,P) f32.
    Layer-0 rows are placed at `row_offset` so the MLP consumes the packed
    [eps|x|u] input directly.  Zero rows/cols guarantee padded lanes never
    pollute valid outputs (even through sigmoid's 0.5 on pad lanes)."""
    L = len(Ws)
    w_stack = jnp.zeros((L, P, P), jnp.float32)
    b_stack = jnp.zeros((L, 1, P), jnp.float32)
    for c, (W, b) in enumerate(zip(Ws, bs)):
        din, dout = W.shape
        r0 = row_offset if c == 0 else 0
        w_stack = w_stack.at[c, r0:r0 + din, :dout].set(W)
        b_stack = b_stack.at[c, 0, :dout].set(b)
    return w_stack.astype(jnp.bfloat16), b_stack


def _stack_fused_encoder(Wg, bg, Wv, bv, P, row_offset):
    """Fuse the g and logv MLPs (identical layer dims) into one stacked MLP:
    layer-0 weights concatenated along the output dim (shared xu input placed
    at `row_offset`), block-diagonal for the remaining layers.
    Per-layer output lanes: [0:dout] = g branch, [dout:2*dout] = logv branch."""
    L = len(Wg)
    w_stack = jnp.zeros((L, P, P), jnp.float32)
    b_stack = jnp.zeros((L, 1, P), jnp.float32)
    for c in range(L):
        din, dout = Wg[c].shape
        assert Wv[c].shape == (din, dout)
        if c == 0:
            w_stack = w_stack.at[c, row_offset:row_offset + din, :dout].set(Wg[c])
            w_stack = w_stack.at[c, row_offset:row_offset + din,
                                 dout:2 * dout].set(Wv[c])
        else:
            w_stack = w_stack.at[c, :din, :dout].set(Wg[c])
            w_stack = w_stack.at[c, din:2 * din, dout:2 * dout].set(Wv[c])
        b_stack = b_stack.at[c, 0, :dout].set(bg[c])
        b_stack = b_stack.at[c, 0, dout:2 * dout].set(bv[c])
    return w_stack.astype(jnp.bfloat16), b_stack


# --------------------------------- iVAE --------------------------------------
class iVAE:
    """JAX/Pallas port of the PyTorch iVAE forward pass."""

    def __init__(self, latent_dim, data_dim, aux_dim, n_layers=3, hidden_dim=50,
                 activation="lrelu", slope=0.1, key=None):
        self.latent_dim = latent_dim
        self.data_dim = data_dim
        self.aux_dim = aux_dim
        self.n_layers = n_layers
        self.slope = float(slope)

        if isinstance(activation, str):
            acts = [activation] * (n_layers - 1)
        elif isinstance(activation, list):
            acts = activation
        else:
            raise ValueError(f"Wrong argument type for activation: {activation}")
        self.acts = tuple(acts)

        dims_logl = _mlp_layer_dims(aux_dim, latent_dim, hidden_dim, n_layers)
        dims_f = _mlp_layer_dims(latent_dim, data_dim, hidden_dim, n_layers)
        dims_g = _mlp_layer_dims(data_dim + aux_dim, latent_dim, hidden_dim, n_layers)
        dims_logv = _mlp_layer_dims(data_dim + aux_dim, latent_dim, hidden_dim, n_layers)

        # Common lane-aligned width P: must cover the packed [eps|x|u] input,
        # the packed [f|g|v|z|lam] output, every K/N of the logl / f MLPs, and
        # the doubled (g||logv) widths of the fused encoder.
        # TODO(synk): if hidden_dim ever scales >=128, pad each layer's dims
        #             independently (ragged stacks) instead of one global P.
        in_width = latent_dim + data_dim + aux_dim
        out_width = data_dim + 4 * latent_dim
        widths = [in_width, out_width]
        for (din, dout) in dims_logl + dims_f:
            widths += [din, dout]
        for c, (din, dout) in enumerate(dims_g):
            widths.append(2 * dout)
            widths.append(in_width if c == 0 else 2 * din)
        self.P = _round_up(max(widths), 128)
        self.P_out = _round_up(out_width, 128)

        if key is None:
            key = jax.random.PRNGKey(0)
        key, self.Wl, self.bl = _init_mlp_params(key, dims_logl)
        key, self.Wf, self.bf = _init_mlp_params(key, dims_f)
        key, self.Wg, self.bg = _init_mlp_params(key, dims_g)
        key, self.Wv, self.bv = _init_mlp_params(key, dims_logv)

        wl, bl = _stack_padded(self.Wl, self.bl, self.P,
                               row_offset=latent_dim + data_dim)   # u lanes
        wgv, bgv = _stack_fused_encoder(self.Wg, self.bg, self.Wv, self.bv,
                                        self.P, row_offset=latent_dim)  # xu lanes
        wf, bf = _stack_padded(self.Wf, self.bf, self.P, row_offset=0)   # z lanes
        self.params = dict(wl=wl, bl=bl, wgv=wgv, bgv=bgv, wf=wf, bf=bf)

        self.prior_mean = jnp.zeros((1,), jnp.float32)
        self.decoder_var = jnp.full((1,), 0.01, jnp.float32)

        self._fwd = jax.jit(functools.partial(
            _ivae_forward,
            latent_dim=latent_dim, data_dim=data_dim, aux_dim=aux_dim,
            n_layers=n_layers, acts=self.acts, slope=self.slope,
            P=self.P, P_out=self.P_out))

    def __call__(self, x, u, eps):
        f, g, v, z, lam = self._fwd(self.params, x, u, eps)
        # matches torch: (decoder_params, encoder_params, z, prior_params)
        return (f, self.decoder_var), (g, v), z, (self.prior_mean, lam)


# ------------------------------ reference check ------------------------------
def _bf16_round(a):
    return a.astype(jnp.bfloat16).astype(jnp.float32)


def _ref_mlp(h, Ws, bs, acts, slope, n_layers):
    # Mirrors the kernel math: bf16-rounded operands, f32 accumulation.
    for c in range(n_layers):
        h = _bf16_round(h) @ _bf16_round(Ws[c]) + bs[c]
        if c != n_layers - 1:
            h = _apply_act(h, acts[c], slope)
    return h


def _ref_forward(model, x, u, eps):
    x, u, eps = _bf16_round(x), _bf16_round(u), _bf16_round(eps)
    lam = jnp.exp(_ref_mlp(u, model.Wl, model.bl, model.acts, model.slope,
                           model.n_layers))
    xu = jnp.concatenate([x, u], axis=1)
    g = _ref_mlp(xu, model.Wg, model.bg, model.acts, model.slope, model.n_layers)
    v = jnp.exp(_ref_mlp(xu, model.Wv, model.bv, model.acts, model.slope,
                         model.n_layers))
    z = g + eps * jnp.sqrt(v)
    f = _ref_mlp(z, model.Wf, model.bf, model.acts, model.slope, model.n_layers)
    return f, g, v, z, lam


if __name__ == "__main__":
    key = jax.random.PRNGKey(0)
    batch, latent_dim, data_dim, aux_dim, hidden_dim, n_layers = 2, 8, 16, 4, 32, 3

    model = iVAE(latent_dim, data_dim, aux_dim, n_layers=n_layers,
                 hidden_dim=hidden_dim, activation="lrelu", slope=0.1,
                 key=jax.random.PRNGKey(42))

    kx, ku, ke = jax.random.split(key, 3)
    x = jax.random.normal(kx, (batch, data_dim), jnp.float32)
    u = jax.random.normal(ku, (batch, aux_dim), jnp.float32)
    eps = jax.random.normal(ke, (batch, latent_dim), jnp.float32)

    (f, dec_var), (g, v), z, (prior_mean, lam) = model(x, u, eps)
    jax.block_until_ready((f, g, v, z, lam))

    f_r, g_r, v_r, z_r, lam_r = _ref_forward(model, x, u, eps)
    # bf16 MXU operands -> compare against a bf16-rounded f32 reference with a
    # loosened tolerance (the old 1e-5 f32 tolerance no longer applies).
    checks = ((f, f_r, "f"), (g, g_r, "g"), (v, v_r, "v"),
              (z, z_r, "z"), (lam, lam_r, "lam"))
    for got, ref, name in checks:
        assert got.shape == ref.shape, f"shape mismatch: {name}"
        assert jnp.allclose(got, ref, atol=2e-3, rtol=2e-3), \
            f"mismatch vs reference: {name}"
    assert f.shape == (batch, data_dim)
    assert z.shape == (batch, latent_dim)

    print("KERNEL_OK")
</pallas_src>

<mosaic_0001>
module attributes {stable_mosaic.version = 11 : i64} {
  func.func @_ivae_fused_kernel(%arg0: i32, %arg1: memref<8x128xbf16, #tpu.memory_space<vmem>>, %arg2: memref<3x128x128xbf16, #tpu.memory_space<vmem>>, %arg3: memref<3x1x128xf32, #tpu.memory_space<vmem>>, %arg4: memref<3x128x128xbf16, #tpu.memory_space<vmem>>, %arg5: memref<3x1x128xf32, #tpu.memory_space<vmem>>, %arg6: memref<3x128x128xbf16, #tpu.memory_space<vmem>>, %arg7: memref<3x1x128xf32, #tpu.memory_space<vmem>>, %arg8: memref<8x128xf32, #tpu.memory_space<vmem>>) attributes {dimension_semantics = [#tpu.dimension_semantics<parallel>], iteration_bounds = array<i64: 1>, scalar_prefetch = 0 : i64, scratch_operands = 0 : i64, tpu.core_type = #tpu.core_type<tc>, window_params = [{transform_indices = @transform_0, window_bounds = array<i64: 8, 128>}, {pipeline_mode = #tpu.pipeline_mode<synchronous>, transform_indices = @transform_1, window_bounds = array<i64: 3, 128, 128>}, {pipeline_mode = #tpu.pipeline_mode<synchronous>, transform_indices = @transform_2, window_bounds = array<i64: 3, 1, 128>}, {pipeline_mode = #tpu.pipeline_mode<synchronous>, transform_indices = @transform_3, window_bounds = array<i64: 3, 128, 128>}, {pipeline_mode = #tpu.pipeline_mode<synchronous>, transform_indices = @transform_4, window_bounds = array<i64: 3, 1, 128>}, {pipeline_mode = #tpu.pipeline_mode<synchronous>, transform_indices = @transform_5, window_bounds = array<i64: 3, 128, 128>}, {pipeline_mode = #tpu.pipeline_mode<synchronous>, transform_indices = @transform_6, window_bounds = array<i64: 3, 1, 128>}, {transform_indices = @transform_7, window_bounds = array<i64: 8, 128>}]} {
    %c0 = arith.constant 0 : index
    %c0_0 = arith.constant 0 : index
    %0 = vector.load %arg1[%c0, %c0_0] : memref<8x128xbf16, #tpu.memory_space<vmem>>, vector<8x128xbf16>
    %1 = tpu.iota {dimensions = array<i32: 1>} : vector<8x128xi32>
    %c8_i32 = arith.constant 8 : i32
    %2 = vector.broadcast %c8_i32 : i32 to vector<8x128xi32>
    %3 = arith.cmpi slt, %1, %2 : vector<8x128xi32>
    %c0_1 = arith.constant 0 : index
    %c0_2 = arith.constant 0 : index
    %c0_3 = arith.constant 0 : index
    %4 = vector.load %arg2[%c0_1, %c0_2, %c0_3] : memref<3x128x128xbf16, #tpu.memory_space<vmem>>, vector<1x128x128xbf16>
    %5 = vector.shape_cast %4 : vector<1x128x128xbf16> to vector<128x128xbf16>
    %cst = arith.constant dense<0.000000e+00> : vector<8x128xf32>
    %6 = tpu.matmul %0, %5, %cst {dimension_numbers = #tpu.dot_dimension_numbers<[1], [0], [0], [1], [0, 0, 1, 1], [], []>} : vector<8x128xbf16>, vector<128x128xbf16>, vector<8x128xf32> -> vector<8x128xf32>
    %c0_4 = arith.constant 0 : index
    %c0_5 = arith.constant 0 : index
    %c0_6 = arith.constant 0 : index
    %7 = vector.load %arg3[%c0_4, %c0_5, %c0_6] : memref<3x1x128xf32, #tpu.memory_space<vmem>>, vector<1x1x128xf32>
    %8 = vector.shape_cast %7 : vector<1x1x128xf32> to vector<1x128xf32>
    %9 = vector.broadcast %8 : vector<1x128xf32> to vector<8x128xf32>
    %10 = arith.addf %6, %9 : vector<8x128xf32>
    %cst_7 = arith.constant 0.000000e+00 : f32
    %11 = vector.broadcast %cst_7 : f32 to vector<8x128xf32>
    %12 = arith.cmpf oge, %10, %11 : vector<8x128xf32>
    %cst_8 = arith.constant 1.000000e-01 : f32
    %13 = vector.broadcast %cst_8 : f32 to vector<8x128xf32>
    %14 = arith.mulf %13, %10 : vector<8x128xf32>
    %15 = arith.select %12, %10, %14 : vector<8x128xi1>, vector<8x128xf32>
    %16 = arith.truncf %15 : vector<8x128xf32> to vector<8x128xbf16>
    %c1 = arith.constant 1 : index
    %c0_9 = arith.constant 0 : index
    %c0_10 = arith.constant 0 : index
    %17 = vector.load %arg2[%c1, %c0_9, %c0_10] : memref<3x128x128xbf16, #tpu.memory_space<vmem>>, vector<1x128x128xbf16>
    %18 = vector.shape_cast %17 : vector<1x128x128xbf16> to vector<128x128xbf16>
    %cst_11 = arith.constant dense<0.000000e+00> : vector<8x128xf32>
    %19 = tpu.matmul %16, %18, %cst_11 {dimension_numbers = #tpu.dot_dimension_numbers<[1], [0], [0], [1], [0, 0, 1, 1], [], []>} : vector<8x128xbf16>, vector<128x128xbf16>, vector<8x128xf32> -> vector<8x128xf32>
    %c1_12 = arith.constant 1 : index
    %c0_13 = arith.constant 0 : index
    %c0_14 = arith.constant 0 : index
    %20 = vector.load %arg3[%c1_12, %c0_13, %c0_14] : memref<3x1x128xf32, #tpu.memory_space<vmem>>, vector<1x1x128xf32>
    %21 = vector.shape_cast %20 : vector<1x1x128xf32> to vector<1x128xf32>
    %22 = vector.broadcast %21 : vector<1x128xf32> to vector<8x128xf32>
    %23 = arith.addf %19, %22 : vector<8x128xf32>
    %cst_15 = arith.constant 0.000000e+00 : f32
    %24 = vector.broadcast %cst_15 : f32 to vector<8x128xf32>
    %25 = arith.cmpf oge, %23, %24 : vector<8x128xf32>
    %cst_16 = arith.constant 1.000000e-01 : f32
    %26 = vector.broadcast %cst_16 : f32 to vector<8x128xf32>
    %27 = arith.mulf %26, %23 : vector<8x128xf32>
    %28 = arith.select %25, %23, %27 : vector<8x128xi1>, vector<8x128xf32>
    %29 = arith.truncf %28 : vector<8x128xf32> to vector<8x128xbf16>
    %c2 = arith.constant 2 : index
    %c0_17 = arith.constant 0 : index
    %c0_18 = arith.constant 0 : index
    %30 = vector.load %arg2[%c2, %c0_17, %c0_18] : memref<3x128x128xbf16, #tpu.memory_space<vmem>>, vector<1x128x128xbf16>
    %31 = vector.shape_cast %30 : vector<1x128x128xbf16> to vector<128x128xbf16>
    %cst_19 = arith.constant dense<0.000000e+00> : vector<8x128xf32>
    %32 = tpu.matmul %29, %31, %cst_19 {dimension_numbers = #tpu.dot_dimension_numbers<[1], [0], [0], [1], [0, 0, 1, 1], [], []>} : vector<8x128xbf16>, vector<128x128xbf16>, vector<8x128xf32> -> vector<8x128xf32>
    %c2_20 = arith.constant 2 : index
    %c0_21 = arith.constant 0 : index
    %c0_22 = arith.constant 0 : index
    %33 = vector.load %arg3[%c2_20, %c0_21, %c0_22] : memref<3x1x128xf32, #tpu.memory_space<vmem>>, vector<1x1x128xf32>
    %34 = vector.shape_cast %33 : vector<1x1x128xf32> to vector<1x128xf32>
    %35 = vector.broadcast %34 : vector<1x128xf32> to vector<8x128xf32>
    %36 = arith.addf %32, %35 : vector<8x128xf32>
    %37 = math.exp %36 : vector<8x128xf32>
    %cst_23 = arith.constant 0.000000e+00 : f32
    %38 = vector.broadcast %cst_23 : f32 to vector<8x128xf32>
    %39 = arith.select %3, %37, %38 : vector<8x128xi1>, vector<8x128xf32>
    %c0_24 = arith.constant 0 : index
    %c0_25 = arith.constant 0 : index
    %c0_26 = arith.constant 0 : index
    %40 = vector.load %arg4[%c0_24, %c0_25, %c0_26] : memref<3x128x128xbf16, #tpu.memory_space<vmem>>, vector<1x128x128xbf16>
    %41 = vector.shape_cast %40 : vector<1x128x128xbf16> to vector<128x128xbf16>
    %cst_27 = arith.constant dense<0.000000e+00> : vector<8x128xf32>
    %42 = tpu.matmul %0, %41, %cst_27 {dimension_numbers = #tpu.dot_dimension_numbers<[1], [0], [0], [1], [0, 0, 1, 1], [], []>} : vector<8x128xbf16>, vector<128x128xbf16>, vector<8x128xf32> -> vector<8x128xf32>
    %c0_28 = arith.constant 0 : index
    %c0_29 = arith.constant 0 : index
    %c0_30 = arith.constant 0 : index
    %43 = vector.load %arg5[%c0_28, %c0_29, %c0_30] : memref<3x1x128xf32, #tpu.memory_space<vmem>>, vector<1x1x128xf32>
    %44 = vector.shape_cast %43 : vector<1x1x128xf32> to vector<1x128xf32>
    %45 = vector.broadcast %44 : vector<1x128xf32> to vector<8x128xf32>
    %46 = arith.addf %42, %45 : vector<8x128xf32>
    %cst_31 = arith.constant 0.000000e+00 : f32
    %47 = vector.broadcast %cst_31 : f32 to vector<8x128xf32>
    %48 = arith.cmpf oge, %46, %47 : vector<8x128xf32>
    %cst_32 = arith.constant 1.000000e-01 : f32
    %49 = vector.broadcast %cst_32 : f32 to vector<8x128xf32>
    %50 = arith.mulf %49, %46 : vector<8x128xf32>
    %51 = arith.select %48, %46, %50 : vector<8x128xi1>, vector<8x128xf32>
    %52 = arith.truncf %51 : vector<8x128xf32> to vector<8x128xbf16>
    %c1_33 = arith.constant 1 : index
    %c0_34 = arith.constant 0 : index
    %c0_35 = arith.constant 0 : index
    %53 = vector.load %arg4[%c1_33, %c0_34, %c0_35] : memref<3x128x128xbf16, #tpu.memory_space<vmem>>, vector<1x128x128xbf16>
    %54 = vector.shape_cast %53 : vector<1x128x128xbf16> to vector<128x128xbf16>
    %cst_36 = arith.constant dense<0.000000e+00> : vector<8x128xf32>
    %55 = tpu.matmul %52, %54, %cst_36 {dimension_numbers = #tpu.dot_dimension_numbers<[1], [0], [0], [1], [0, 0, 1, 1], [], []>} : vector<8x128xbf16>, vector<128x128xbf16>, vector<8x128xf32> -> vector<8x128xf32>
    %c1_37 = arith.constant 1 : index
    %c0_38 = arith.constant 0 : index
    %c0_39 = arith.constant 0 : index
    %56 = vector.load %arg5[%c1_37, %c0_38, %c0_39] : memref<3x1x128xf32, #tpu.memory_space<vmem>>, vector<1x1x128xf32>
    %57 = vector.shape_cast %56 : vector<1x1x128xf32> to vector<1x128xf32>
    %58 = vector.broadcast %57 : vector<1x128xf32> to vector<8x128xf32>
    %59 = arith.addf %55, %58 : vector<8x128xf32>
    %cst_40 = arith.constant 0.000000e+00 : f32
    %60 = vector.broadcast %cst_40 : f32 to vector<8x128xf32>
    %61 = arith.cmpf oge, %59, %60 : vector<8x128xf32>
    %cst_41 = arith.constant 1.000000e-01 : f32
    %62 = vector.broadcast %cst_41 : f32 to vector<8x128xf32>
    %63 = arith.mulf %62, %59 : vector<8x128xf32>
    %64 = arith.select %61, %59, %63 : vector<8x128xi1>, vector<8x128xf32>
    %65 = arith.truncf %64 : vector<8x128xf32> to vector<8x128xbf16>
    %c2_42 = arith.constant 2 : index
    %c0_43 = arith.constant 0 : index
    %c0_44 = arith.constant 0 : index
    %66 = vector.load %arg4[%c2_42, %c0_43, %c0_44] : memref<3x128x128xbf16, #tpu.memory_space<vmem>>, vector<1x128x128xbf16>
    %67 = vector.shape_cast %66 : vector<1x128x128xbf16> to vector<128x128xbf16>
    %cst_45 = arith.constant dense<0.000000e+00> : vector<8x128xf32>
    %68 = tpu.matmul %65, %67, %cst_45 {dimension_numbers = #tpu.dot_dimension_numbers<[1], [0], [0], [1], [0, 0, 1, 1], [], []>} : vector<8x128xbf16>, vector<128x128xbf16>, vector<8x128xf32> -> vector<8x128xf32>
    %c2_46 = arith.constant 2 : index
    %c0_47 = arith.constant 0 : index
    %c0_48 = arith.constant 0 : index
    %69 = vector.load %arg5[%c2_46, %c0_47, %c0_48] : memref<3x1x128xf32, #tpu.memory_space<vmem>>, vector<1x1x128xf32>
    %70 = vector.shape_cast %69 : vector<1x1x128xf32> to vector<1x128xf32>
    %71 = vector.broadcast %70 : vector<1x128xf32> to vector<8x128xf32>
    %72 = arith.addf %68, %71 : vector<8x128xf32>
    %cst_49 = arith.constant 0.000000e+00 : f32
    %73 = vector.broadcast %cst_49 : f32 to vector<8x128xf32>
    %74 = arith.select %3, %72, %73 : vector<8x128xi1>, vector<8x128xf32>
    %c120_i32 = arith.constant 120 : i32
    %75 = tpu.dynamic_rotate %72 by %c120_i32 dim 1 : vector<8x128xf32>, i32 -> vector<8x128xf32>
    %76 = math.exp %75 : vector<8x128xf32>
    %cst_50 = arith.constant 0.000000e+00 : f32
    %77 = vector.broadcast %cst_50 : f32 to vector<8x128xf32>
    %78 = arith.select %3, %76, %77 : vector<8x128xi1>, vector<8x128xf32>
    %79 = arith.extf %0 : vector<8x128xbf16> to vector<8x128xf32>
    %cst_51 = arith.constant 0.000000e+00 : f32
    %80 = vector.broadcast %cst_51 : f32 to vector<8x128xf32>
    %81 = arith.select %3, %79, %80 : vector<8x128xi1>, vector<8x128xf32>
    %82 = math.sqrt %78 : vector<8x128xf32>
    %83 = arith.mulf %81, %82 : vector<8x128xf32>
    %84 = arith.addf %74, %83 : vector<8x128xf32>
    %85 = arith.truncf %84 : vector<8x128xf32> to vector<8x128xbf16>
    %c0_52 = arith.constant 0 : index
    %c0_53 = arith.constant 0 : index
    %c0_54 = arith.constant 0 : index
    %86 = vector.load %arg6[%c0_52, %c0_53, %c0_54] : memref<3x128x128xbf16, #tpu.memory_space<vmem>>, vector<1x128x128xbf16>
    %87 = vector.shape_cast %86 : vector<1x128x128xbf16> to vector<128x128xbf16>
    %cst_55 = arith.constant dense<0.000000e+00> : vector<8x128xf32>
    %88 = tpu.matmul %85, %87, %cst_55 {dimension_numbers = #tpu.dot_dimension_numbers<[1], [0], [0], [1], [0, 0, 1, 1], [], []>} : vector<8x128xbf16>, vector<128x128xbf16>, vector<8x128xf32> -> vector<8x128xf32>
    %c0_56 = arith.constant 0 : index
    %c0_57 = arith.constant 0 : index
    %c0_58 = arith.constant 0 : index
    %89 = vector.load %arg7[%c0_56, %c0_57, %c0_58] : memref<3x1x128xf32, #tpu.memory_space<vmem>>, vector<1x1x128xf32>
    %90 = vector.shape_cast %89 : vector<1x1x128xf32> to vector<1x128xf32>
    %91 = vector.broadcast %90 : vector<1x128xf32> to vector<8x128xf32>
    %92 = arith.addf %88, %91 : vector<8x128xf32>
    %cst_59 = arith.constant 0.000000e+00 : f32
    %93 = vector.broadcast %cst_59 : f32 to vector<8x128xf32>
    %94 = arith.cmpf oge, %92, %93 : vector<8x128xf32>
    %cst_60 = arith.constant 1.000000e-01 : f32
    %95 = vector.broadcast %cst_60 : f32 to vector<8x128xf32>
    %96 = arith.mulf %95, %92 : vector<8x128xf32>
    %97 = arith.select %94, %92, %96 : vector<8x128xi1>, vector<8x128xf32>
    %98 = arith.truncf %97 : vector<8x128xf32> to vector<8x128xbf16>
    %c1_61 = arith.constant 1 : index
    %c0_62 = arith.constant 0 : index
    %c0_63 = arith.constant 0 : index
    %99 = vector.load %arg6[%c1_61, %c0_62, %c0_63] : memref<3x128x128xbf16, #tpu.memory_space<vmem>>, vector<1x128x128xbf16>
    %100 = vector.shape_cast %99 : vector<1x128x128xbf16> to vector<128x128xbf16>
    %cst_64 = arith.constant dense<0.000000e+00> : vector<8x128xf32>
    %101 = tpu.matmul %98, %100, %cst_64 {dimension_numbers = #tpu.dot_dimension_numbers<[1], [0], [0], [1], [0, 0, 1, 1], [], []>} : vector<8x128xbf16>, vector<128x128xbf16>, vector<8x128xf32> -> vector<8x128xf32>
    %c1_65 = arith.constant 1 : index
    %c0_66 = arith.constant 0 : index
    %c0_67 = arith.constant 0 : index
    %102 = vector.load %arg7[%c1_65, %c0_66, %c0_67] : memref<3x1x128xf32, #tpu.memory_space<vmem>>, vector<1x1x128xf32>
    %103 = vector.shape_cast %102 : vector<1x1x128xf32> to vector<1x128xf32>
    %104 = vector.broadcast %103 : vector<1x128xf32> to vector<8x128xf32>
    %105 = arith.addf %101, %104 : vector<8x128xf32>
    %cst_68 = arith.constant 0.000000e+00 : f32
    %106 = vector.broadcast %cst_68 : f32 to vector<8x128xf32>
    %107 = arith.cmpf oge, %105, %106 : vector<8x128xf32>
    %cst_69 = arith.constant 1.000000e-01 : f32
    %108 = vector.broadcast %cst_69 : f32 to vector<8x128xf32>
    %109 = arith.mulf %108, %105 : vector<8x128xf32>
    %110 = arith.select %107, %105, %109 : vector<8x128xi1>, vector<8x128xf32>
    %111 = arith.truncf %110 : vector<8x128xf32> to vector<8x128xbf16>
    %c2_70 = arith.constant 2 : index
    %c0_71 = arith.constant 0 : index
    %c0_72 = arith.constant 0 : index
    %112 = vector.load %arg6[%c2_70, %c0_71, %c0_72] : memref<3x128x128xbf16, #tpu.memory_space<vmem>>, vector<1x128x128xbf16>
    %113 = vector.shape_cast %112 : vector<1x128x128xbf16> to vector<128x128xbf16>
    %cst_73 = arith.constant dense<0.000000e+00> : vector<8x128xf32>
    %114 = tpu.matmul %111, %113, %cst_73 {dimension_numbers = #tpu.dot_dimension_numbers<[1], [0], [0], [1], [0, 0, 1, 1], [], []>} : vector<8x128xbf16>, vector<128x128xbf16>, vector<8x128xf32> -> vector<8x128xf32>
    %c2_74 = arith.constant 2 : index
    %c0_75 = arith.constant 0 : index
    %c0_76 = arith.constant 0 : index
    %115 = vector.load %arg7[%c2_74, %c0_75, %c0_76] : memref<3x1x128xf32, #tpu.memory_space<vmem>>, vector<1x1x128xf32>
    %116 = vector.shape_cast %115 : vector<1x1x128xf32> to vector<1x128xf32>
    %117 = vector.broadcast %116 : vector<1x128xf32> to vector<8x128xf32>
    %118 = arith.addf %114, %117 : vector<8x128xf32>
    %c16_i32 = arith.constant 16 : i32
    %119 = tpu.dynamic_rotate %74 by %c16_i32 dim 1 : vector<8x128xf32>, i32 -> vector<8x128xf32>
    %120 = arith.addf %118, %119 : vector<8x128xf32>
    %c24_i32 = arith.constant 24 : i32
    %121 = tpu.dynamic_rotate %78 by %c24_i32 dim 1 : vector<8x128xf32>, i32 -> vector<8x128xf32>
    %122 = arith.addf %120, %121 : vector<8x128xf32>
    %c32_i32 = arith.constant 32 : i32
    %123 = tpu.dynamic_rotate %84 by %c32_i32 dim 1 : vector<8x128xf32>, i32 -> vector<8x128xf32>
    %124 = arith.addf %122, %123 : vector<8x128xf32>
    %c40_i32 = arith.constant 40 : i32
    %125 = tpu.dynamic_rotate %39 by %c40_i32 dim 1 : vector<8x128xf32>, i32 -> vector<8x128xf32>
    %126 = arith.addf %124, %125 : vector<8x128xf32>
    %c0_77 = arith.constant 0 : index
    %c0_78 = arith.constant 0 : index
    %127 = vector.load %arg8[%c0_77, %c0_78] : memref<8x128xf32, #tpu.memory_space<vmem>>, vector<8x128xf32>
    tpu.vector_store %arg8[%c0_77, %c0_78], %126 {strides = array<i32>} : memref<8x128xf32, #tpu.memory_space<vmem>>, vector<8x128xf32>,
    return
  }
  func.func @transform_0(%arg0: i32) -> (i32, i32) {
    %c0_i32 = arith.constant 0 : i32
    %c0_i32_0 = arith.constant 0 : i32
    return %arg0, %c0_i32 : i32, i32
  }
  func.func @transform_1(%arg0: i32) -> (i32, i32, i32) {
    %c0_i32 = arith.constant 0 : i32
    %c0_i32_0 = arith.constant 0 : i32
    %c0_i32_1 = arith.constant 0 : i32
    %c0_i32_2 = arith.constant 0 : i32
    return %c0_i32, %c0_i32_0, %c0_i32_1 : i32, i32, i32
  }
  func.func @transform_2(%arg0: i32) -> (i32, i32, i32) {
    %c0_i32 = arith.constant 0 : i32
    %c0_i32_0 = arith.constant 0 : i32
    %c0_i32_1 = arith.constant 0 : i32
    %c0_i32_2 = arith.constant 0 : i32
    return %c0_i32, %c0_i32_0, %c0_i32_1 : i32, i32, i32
  }
  func.func @transform_3(%arg0: i32) -> (i32, i32, i32) {
    %c0_i32 = arith.constant 0 : i32
    %c0_i32_0 = arith.constant 0 : i32
    %c0_i32_1 = arith.constant 0 : i32
    %c0_i32_2 = arith.constant 0 : i32
    return %c0_i32, %c0_i32_0, %c0_i32_1 : i32, i32, i32
  }
  func.func @transform_4(%arg0: i32) -> (i32, i32, i32) {
    %c0_i32 = arith.constant 0 : i32
    %c0_i32_0 = arith.constant 0 : i32
    %c0_i32_1 = arith.constant 0 : i32
    %c0_i32_2 = arith.constant 0 : i32
    return %c0_i32, %c0_i32_0, %c0_i32_1 : i32, i32, i32
  }
  func.func @transform_5(%arg0: i32) -> (i32, i32, i32) {
    %c0_i32 = arith.constant 0 : i32
    %c0_i32_0 = arith.constant 0 : i32
    %c0_i32_1 = arith.constant 0 : i32
    %c0_i32_2 = arith.constant 0 : i32
    return %c0_i32, %c0_i32_0, %c0_i32_1 : i32, i32, i32
  }
  func.func @transform_6(%arg0: i32) -> (i32, i32, i32) {
    %c0_i32 = arith.constant 0 : i32
    %c0_i32_0 = arith.constant 0 : i32
    %c0_i32_1 = arith.constant 0 : i32
    %c0_i32_2 = arith.constant 0 : i32
    return %c0_i32, %c0_i32_0, %c0_i32_1 : i32, i32, i32
  }
  func.func @transform_7(%arg0: i32) -> (i32, i32) {
    %c0_i32 = arith.constant 0 : i32
    %c0_i32_0 = arith.constant 0 : i32
    return %arg0, %c0_i32 : i32, i32
  }
}

</mosaic_0001>

<bundles_post_ra>
// kernel: _ivae_forward.1
= control target key start
LH: loop header
LB: loop body
LE: loop exit
PB: predicated region body
PF: predicated region fallthrough
CT: control target
= control target key end

     0   :  { %12 = vsyncpa [#allocation3], 0  ;;  %s1891_s0 = inlined_call_operand.vmem [shape: bf16[8,128], index: 0, kind: input, shape index: {}]   ;;  %s1892_s1 = inlined_call_operand.hbm [shape: bf16[3,128,128], index: 1, kind: input, shape index: {}]   ;;  %s1893_s2 = inlined_call_operand.vmem [shape: f32[3,1,128], index: 2, kind: input, shape index: {}]   ;;  %s1894_s3 = inlined_call_operand.hbm [shape: bf16[3,128,128], index: 3, kind: input, shape index: {}]   ;;  %s1895_s4 = inlined_call_operand.vmem [shape: f32[3,1,128], index: 4, kind: input, shape index: {}]   ;;  %s1896_s5 = inlined_call_operand.hbm [shape: bf16[3,128,128], index: 5, kind: input, shape index: {}]   ;;  %s1897_s6 = inlined_call_operand.vmem [shape: f32[3,1,128], index: 6, kind: input, shape index: {}]   ;;  %s1898_s7 = inlined_call_operand.vmem [shape: f32[8,128], index: 7, kind: output, shape index: {}]  }
   0x1   :  { %13 = vsyncpa [#allocation5], 0  ;;  %s1655_s24 = smov [#allocation4]   ;;  %s1656_s26 = smov [#allocation2]  }
   0x2   :  { %s35_s25 = sshll.u32 %s1655_s24, 4  ;;  %s21_s27 = sshll.u32 %s1656_s26, 4  ;;  %s36_s25 = int_to_ptr.vmem [resolvable:$true] %s35_s25  ;;  %s1707_s27 = int_to_ptr.vmem [resolvable:$true] %s21_s27 }
   0x3   :  { %s1585_s30 = scalar_lea.hbm %s1894_s3, 3072 }
   0x4   :  { %p1586_p0 = scmp.ne.s32.totalorder %s1894_s3, %s1585_s30  ;;  %p1589_p1 = scmp.lt.u32.totalorder %s1585_s30, %s1894_s3 }
   0x6   :  { %p1591_p2 = pnand %p1589_p1, %p1586_p0 }
   0x8   :  { %1594 = shalt.err (!%p1591_p2)
}
   0x9   :  { %s1595_s12 = scalar_lea.vmem %s36_s25, 3072  ;;  %p1600_p4 = scmp.lt.s32.totalorder %s36_s25, %s36_s25 }
   0xa   :  { %p1596_p3 = scmp.ne.s32.totalorder %s36_s25, %s1595_s12  ;;  %p1601_p5 = scmp.lt.s32.totalorder %s1595_s12, %s1595_s12 }
   0xc   :  { %p1602_p6 = por %p1601_p5, %p1600_p4 }
   0xe   :  { %p1603_p7 = pnand %p1602_p6, %p1596_p3 }
  0x10   :  { %1606 = shalt.err (!%p1603_p7)
}
  0x11   :  { %s1657_s13 = smov 64   ;;  %s1658_s14 = smov 4  }
  0x12   :  { %41 = dma.hbm_to_vmem [thread:$0]  %s1894_s3, 3072, %s36_s25, [#allocation5], %s1657_s13, %s1657_s13, %s1658_s14  }
  0x13   :  { %s1607_s19 = scalar_lea.hbm %s1892_s1, 3072 }
  0x14   :  { %p1608_p8 = scmp.ne.s32.totalorder %s1892_s1, %s1607_s19  ;;  %p1611_p9 = scmp.lt.u32.totalorder %s1607_s19, %s1892_s1 }
  0x16   :  { %p1613_p10 = pnand %p1611_p9, %p1608_p8 }
  0x18   :  { %1616 = shalt.err (!%p1613_p10)
}
  0x19   :  { %s1617_s24 = scalar_lea.vmem %s1707_s27, 3072  ;;  %p1622_p12 = scmp.lt.s32.totalorder %s1707_s27, %s1707_s27 }
  0x1a   :  { %p1618_p11 = scmp.ne.s32.totalorder %s1707_s27, %s1617_s24  ;;  %p1623_p13 = scmp.lt.s32.totalorder %s1617_s24, %s1617_s24 }
  0x1c   :  { %p1624_p0 = por %p1623_p13, %p1622_p12 }
  0x1e   :  { %p1625_p1 = pnand %p1624_p0, %p1618_p11 }
  0x20   :  { %1628 = shalt.err (!%p1625_p1)
}
  0x21   :  { %27 = dma.hbm_to_vmem [thread:$0]  %s1892_s1, 3072, %s1707_s27, [#allocation3], %s1657_s13, %s1657_s13, %s1658_s14  }
  0x22   :  { %s1659_s26 = smov [#allocation6]   ;;  %s1629_s8 = scalar_lea.hbm %s1896_s5, 3072 }
  0x23   :  { %s49_s28 = sshll.u32 %s1659_s26, 4  ;;  %p1630_p2 = scmp.ne.s32.totalorder %s1896_s5, %s1629_s8  ;;  %s50_s28 = int_to_ptr.vmem [resolvable:$true] %s49_s28 }
  0x24   :  { %p1633_p3 = scmp.lt.u32.totalorder %s1629_s8, %s1896_s5 }
  0x26   :  { %p1635_p4 = pnand %p1633_p3, %p1630_p2 }
  0x28   :  { %1638 = shalt.err (!%p1635_p4)
}
  0x29   :  { %s1639_s15 = scalar_lea.vmem %s50_s28, 3072  ;;  %p1644_p6 = scmp.lt.s32.totalorder %s50_s28, %s50_s28 }
  0x2a   :  { %p1640_p5 = scmp.ne.s32.totalorder %s50_s28, %s1639_s15  ;;  %p1645_p7 = scmp.lt.s32.totalorder %s1639_s15, %s1639_s15 }
  0x2c   :  { %p1646_p8 = por %p1645_p7, %p1644_p6 }
  0x2e   :  { %p1647_p9 = pnand %p1646_p8, %p1640_p5 }
  0x30   :  { %1650 = shalt.err (!%p1647_p9)
}
  0x31   :  { %55 = dma.hbm_to_vmem [thread:$0]  %s1896_s5, 3072, %s50_s28, [#allocation5], %s1657_s13, %s1657_s13, %s1658_s14  }
  0x32   :  { %1651 = dma.done.wait [#allocation3], 3072  }
  0x33   :  { %1652 = vsyncadd [#allocation3], 4294964224 }
  0x34   :  { %1653 = dma.done.wait [#allocation5], 6144  }
  0x35   :  { %1654 = vsyncadd [#allocation5], 4294961152  ;;  %v1660_v0 = vmov 0.0   ;;  %vm1661_vm0 = vmmov 0   ;;  %v1507_v1 = vld [vmem:[#allocation2] sm:$0xff]   ;;  %v1508_v2 = vld [vmem:[#allocation2 + $0x8] sm:$0xff]  }
  0x36   :  { %1315 = vmatprep.subr.bf16.mxu0 %v1660_v0  ;;  %1331 = vmatprep.mubr.msk.bf16.mxu0 %vm1661_vm0, %v1660_v0  ;;  %v1509_v3 = vld [vmem:[#allocation2 + $0x10] sm:$0xff]   ;;  %v1515_v4 = vld [vmem:[#allocation2 + $0x40] sm:$0xff]   ;;  %v1510_v5 = vld [vmem:[#allocation2 + $0x18] sm:$0xff]   ;;  %s1664_s25 = smov 40   ;;  %s1665_s26 = smov 24  }
  0x37   :  { %1335 = vmatprep.subr.bf16.mxu1 %v1660_v0  ;;  %1351 = vmatprep.mubr.msk.bf16.mxu1 %vm1661_vm0, %v1660_v0  ;;  %v1516_v6 = vld [vmem:[#allocation2 + $0x48] sm:$0xff]   ;;  %v1511_v7 = vld [vmem:[#allocation2 + $0x20] sm:$0xff]   ;;  %v1517_v8 = vld [vmem:[#allocation2 + $0x50] sm:$0xff]   ;;  %s1666_s28 = smov 32  }
  0x38   :  { %1316 = vmatpush3.bf16.msra.mxu0 %v1507_v1  ;;  %1336 = vmatpush3.bf16.msra.mxu1 %v1515_v4  ;;  %v1512_v9 = vld [vmem:[#allocation2 + $0x28] sm:$0xff]   ;;  %v1518_v10 = vld [vmem:[#allocation2 + $0x58] sm:$0xff]   ;;  %v1513_v11 = vld [vmem:[#allocation2 + $0x30] sm:$0xff]  }
  0x39   :  { %1317 = vmatprep.subr.bf16.mxu0 %v1660_v0  ;;  %1337 = vmatprep.subr.bf16.mxu1 %v1660_v0  ;;  %v1519_v12 = vld [vmem:[#allocation2 + $0x60] sm:$0xff]   ;;  %v1514_v13 = vld [vmem:[#allocation2 + $0x38] sm:$0xff]   ;;  %v1520_v14 = vld [vmem:[#allocation2 + $0x68] sm:$0xff]  }
  0x3a   :  { %v1779_v15 = vld [vmem:[%s1891_s0] sm:$0xf]  ;;  %v1521_v16 = vld [vmem:[#allocation2 + $0x70] sm:$0xff]   ;;  %v1522_v17 = vld [vmem:[#allocation2 + $0x78] sm:$0xff]  }
  0x3b   :  { %v1531_v18 = vld [vmem:[#allocation2 + $0x80] sm:$0xff]   ;;  %v1532_v19 = vld [vmem:[#allocation2 + $0x88] sm:$0xff]   ;;  %v1533_v20 = vld [vmem:[#allocation2 + $0x90] sm:$0xff]  }
  0x3c   :  { %1318 = vmatpush3.bf16.msra.mxu0 %v1508_v2  ;;  %1338 = vmatpush3.bf16.msra.mxu1 %v1516_v6  ;;  %v1534_v21 = vld [vmem:[#allocation2 + $0x98] sm:$0xff]   ;;  %v1535_v22 = vld [vmem:[#allocation2 + $0xa0] sm:$0xff]   ;;  %v1536_v23 = vld [vmem:[#allocation2 + $0xa8] sm:$0xff]  }
  0x3d   :  { %1319 = vmatprep.subr.bf16.mxu0 %v1660_v0  ;;  %1339 = vmatprep.subr.bf16.mxu1 %v1660_v0  ;;  %v1147_v24 = vld [vmem:[%s1893_s2] ss:$0 sm:$0xff]  ;;  %v1524_v34 = vld [vmem:[#allocation4 + $0x8] sm:$0xff]   ;;  %v1525_v35 = vld [vmem:[#allocation4 + $0x10] sm:$0xff]  }
  0x3e   :  { %v1523_v32 = vld [vmem:[#allocation4] sm:$0xff]   ;;  %v1526_v36 = vld [vmem:[#allocation4 + $0x18] sm:$0xff]   ;;  %v1528_v38 = vld [vmem:[#allocation4 + $0x28] sm:$0xff]  }
  0x3f   :  { %v1527_v37 = vld [vmem:[#allocation4 + $0x20] sm:$0xff]   ;;  %v1529_v39 = vld [vmem:[#allocation4 + $0x30] sm:$0xff]   ;;  %v1530_v40 = vld [vmem:[#allocation4 + $0x38] sm:$0xff]  }
  0x40   :  { %1320 = vmatpush3.bf16.msra.mxu0 %v1509_v3  ;;  %1340 = vmatpush3.bf16.msra.mxu1 %v1517_v8  ;;  %v1537_v41 = vld [vmem:[#allocation2 + $0xb0] sm:$0xff]   ;;  %v1538_v42 = vld [vmem:[#allocation2 + $0xb8] sm:$0xff]   ;;  %v1157_v43 = vld [vmem:[%s1893_s2 + $0x1] ss:$0 sm:$0xff] }
  0x41   :  { %1321 = vmatprep.subr.bf16.mxu0 %v1660_v0  ;;  %1341 = vmatprep.subr.bf16.mxu1 %v1660_v0  ;;  %v1539_v51 = vld [vmem:[#allocation4 + $0x40] sm:$0xff]   ;;  %v1540_v53 = vld [vmem:[#allocation4 + $0x48] sm:$0xff]   ;;  %v1541_v54 = vld [vmem:[#allocation4 + $0x50] sm:$0xff]  }
  0x42   :  { %v1542_v55 = vld [vmem:[#allocation4 + $0x58] sm:$0xff]   ;;  %v1543_v56 = vld [vmem:[#allocation4 + $0x60] sm:$0xff]   ;;  %v1544_v57 = vld [vmem:[#allocation4 + $0x68] sm:$0xff]  }
  0x43   :  { %v1545_v58 = vld [vmem:[#allocation4 + $0x70] sm:$0xff]   ;;  %v1176_v59 = vld [vmem:[%s1895_s4] ss:$0 sm:$0xff]  ;;  %v1546_v63 = vld [vmem:[#allocation4 + $0x78] sm:$0xff]  }
  0x44   :  { %1322 = vmatpush3.bf16.msra.mxu0 %v1510_v5  ;;  %1342 = vmatpush3.bf16.msra.mxu1 %v1518_v10  ;;  %v1547_v6 = vld [vmem:[#allocation4 + $0x80] sm:$0xff]   ;;  %v1549_v8 = vld [vmem:[#allocation4 + $0x90] sm:$0xff]  }
  0x45   :  { %1323 = vmatprep.subr.bf16.mxu0 %v1660_v0  ;;  %1343 = vmatprep.subr.bf16.mxu1 %v1660_v0  ;;  %v1551_v10 = vld [vmem:[#allocation4 + $0xa0] sm:$0xff]  }
  0x48   :  { %1324 = vmatpush3.bf16.msra.mxu0 %v1511_v7  ;;  %1344 = vmatpush3.bf16.msra.mxu1 %v1519_v12  ;;  %v1548_v7 = vld [vmem:[#allocation4 + $0x88] sm:$0xff]   ;;  %v1553_v12 = vld [vmem:[#allocation4 + $0xb0] sm:$0xff]  }
  0x49   :  { %1325 = vmatprep.subr.bf16.mxu0 %v1660_v0  ;;  %1345 = vmatprep.subr.bf16.mxu1 %v1660_v0 }
  0x4c   :  { %1326 = vmatpush3.bf16.msra.mxu0 %v1512_v9  ;;  %1346 = vmatpush3.bf16.msra.mxu1 %v1520_v14  ;;  %v1550_v9 = vld [vmem:[#allocation4 + $0x98] sm:$0xff]  }
  0x4d   :  { %1327 = vmatprep.subr.bf16.mxu0 %v1660_v0  ;;  %1347 = vmatprep.subr.bf16.mxu1 %v1660_v0 }
  0x50   :  { %1328 = vmatpush3.bf16.msra.mxu0 %v1513_v11  ;;  %1348 = vmatpush3.bf16.msra.mxu1 %v1521_v16  ;;  %v1552_v11 = vld [vmem:[#allocation4 + $0xa8] sm:$0xff]  }
  0x51   :  { %1329 = vmatprep.subr.bf16.mxu0 %v1660_v0  ;;  %1349 = vmatprep.subr.bf16.mxu1 %v1660_v0 }
  0x54   :  { %1330 = vmatpush3.bf16.msra.mxu0 %v1514_v13  ;;  %1350 = vmatpush3.bf16.msra.mxu1 %v1522_v17  ;;  %v1554_v13 = vld [vmem:[#allocation4 + $0xb8] sm:$0xff]  }
  0x55   :  { %1355 = vmatprep.subr.bf16.mxu0 %v1660_v0  ;;  %1375 = vmatprep.subr.bf16.mxu1 %v1660_v0 }
  0x57   :  { %1332 = vmatmul.mubr.bf16.vlgmr.msra.gmra.mrb[0].mxu0 %v1779_v15 }
  0x58   :  { %1371 = vmatprep.mubr.msk.bf16.mxu0 %vm1661_vm0, %v1660_v0  ;;  %1356 = vmatpush3.bf16.msra.mxu0 %v1531_v18 }
  0x59   :  { %1357 = vmatprep.subr.bf16.mxu0 %v1660_v0 }
  0x5c   :  { %1358 = vmatpush3.bf16.msra.mxu0 %v1532_v19  ;;  %v1186_v19 = vld [vmem:[%s1895_s4 + $0x1] ss:$0 sm:$0xff] }
  0x5d   :  { %1359 = vmatprep.subr.bf16.mxu0 %v1660_v0 }
  0x60   :  { %1360 = vmatpush3.bf16.msra.mxu0 %v1533_v20 }
  0x61   :  { %1361 = vmatprep.subr.bf16.mxu0 %v1660_v0 }
  0x64   :  { %1362 = vmatpush3.bf16.msra.mxu0 %v1534_v21 }
  0x65   :  { %1363 = vmatprep.subr.bf16.mxu0 %v1660_v0 }
  0x68   :  { %1364 = vmatpush3.bf16.msra.mxu0 %v1535_v22 }
  0x69   :  { %1365 = vmatprep.subr.bf16.mxu0 %v1660_v0 }
  0x6c   :  { %1366 = vmatpush3.bf16.msra.mxu0 %v1536_v23 }
  0x6d   :  { %1367 = vmatprep.subr.bf16.mxu0 %v1660_v0 }
  0x70   :  { %1368 = vmatpush3.bf16.msra.mxu0 %v1537_v41 }
  0x71   :  { %1369 = vmatprep.subr.bf16.mxu0 %v1660_v0 }
  0x74   :  { %1370 = vmatpush3.bf16.msra.mxu0 %v1538_v42  ;;  %v1558_v42 = vld [vmem:[#allocation6 + $0x18] sm:$0xff]  }
  0x75   :  { %1395 = vmatprep.subr.bf16.mxu0 %v1660_v0 }
 0x12a   :  { %v177_v25 = vpop.f32.mrb[0].mxu0 }
 0x12b   :  { %v178_v26 = vadd.f32 %v1147_v24, %v177_v25  ;;  %v1333_v27 = vpop.f32.mrb[1].mxu0 }
 0x12c   :  { %v180_v28 = vpop.f32.mrb[2].mxu0 }
 0x12d   :  { %vm183_vm1 = vcmp.ge.f32.partialorder %v178_v26, 0.0  ;;  %v184_v29 = vmul.f32 0.1, %v178_v26  ;;  %v1334_v30 = vpop.f32.mrb[3].mxu0  ;;  %v1167_v28 = vld [vmem:[%s1893_s2 + $0x2] ss:$0 sm:$0xff] }
 0x12e   :  { %v1555_v30 = vld [vmem:[#allocation6] sm:$0xff]   ;;  %s1662_s2 = smov 120  }
 0x12f   :  { %v185_v31 = vsel %vm183_vm1, %v178_v26, %v184_v29 }
 0x130   :  { %v186_v33 = vpack.c.bf16 %v185_v31, %v185_v31 }
 0x132   :  { %1352 = vmatmul.mubr.bf16.vlgmr.msra.gmra.mrb[0].mxu1 %v186_v33  ;;  %v69_v33 = vlaneseq }
 0x133   :  { %1376 = vmatpush3.bf16.msra.mxu1 %v1523_v32  ;;  %1391 = vmatprep.mubr.msk.bf16.mxu1 %vm1661_vm0, %v1660_v0  ;;  %v1556_v32 = vld [vmem:[#allocation6 + $0x8] sm:$0xff]  }
 0x134   :  { %1377 = vmatprep.subr.bf16.mxu1 %v1660_v0 }
 0x137   :  { %1378 = vmatpush3.bf16.msra.mxu1 %v1524_v34  ;;  %v1196_v34 = vld [vmem:[%s1895_s4 + $0x2] ss:$0 sm:$0xff]  ;;  %s1663_s4 = smov 16  }
 0x138   :  { %1379 = vmatprep.subr.bf16.mxu1 %v1660_v0 }
 0x13b   :  { %1380 = vmatpush3.bf16.msra.mxu1 %v1525_v35  ;;  %v1557_v35 = vld [vmem:[#allocation6 + $0x10] sm:$0xff]  }
 0x13c   :  { %1381 = vmatprep.subr.bf16.mxu1 %v1660_v0 }
 0x13f   :  { %1382 = vmatpush3.bf16.msra.mxu1 %v1526_v36 }
 0x140   :  { %1383 = vmatprep.subr.bf16.mxu1 %v1660_v0 }
 0x143   :  { %1384 = vmatpush3.bf16.msra.mxu1 %v1527_v37 }
 0x144   :  { %1385 = vmatprep.subr.bf16.mxu1 %v1660_v0 }
 0x147   :  { %1386 = vmatpush3.bf16.msra.mxu1 %v1528_v38 }
 0x148   :  { %1387 = vmatprep.subr.bf16.mxu1 %v1660_v0 }
 0x14b   :  { %1388 = vmatpush3.bf16.msra.mxu1 %v1529_v39  ;;  %v70_v39 = vand.u32 127, %v69_v33 }
 0x14c   :  { %1389 = vmatprep.subr.bf16.mxu1 %v1660_v0 }
 0x14d   :  { %vm71_vm5 = vcmp.lt.s32.totalorder %v70_v39, 8 }
 0x14f   :  { %1390 = vmatpush3.bf16.msra.mxu1 %v1530_v40 }
 0x150   :  { %1415 = vmatprep.subr.bf16.mxu1 %v1660_v0 }
 0x152   :  { %1392 = vmatmul.mubr.bf16.vlgmr.msra.gmra.mrb[4].mxu1 %v1779_v15 }
 0x153   :  { %1431 = vmatprep.mubr.msk.bf16.mxu1 %vm1661_vm0, %v1660_v0  ;;  %1416 = vmatpush3.bf16.msra.mxu1 %v1547_v6  ;;  %v1569_v6 = vld [vmem:[#allocation6 + $0x70] sm:$0xff]  }
 0x154   :  { %1417 = vmatprep.subr.bf16.mxu1 %v1660_v0 }
 0x157   :  { %1418 = vmatpush3.bf16.msra.mxu1 %v1548_v7  ;;  %v1570_v7 = vld [vmem:[#allocation6 + $0x78] sm:$0xff]  }
 0x158   :  { %1419 = vmatprep.subr.bf16.mxu1 %v1660_v0 }
 0x15b   :  { %1420 = vmatpush3.bf16.msra.mxu1 %v1549_v8  ;;  %v1571_v8 = vld [vmem:[#allocation6 + $0x80] sm:$0xff]  }
 0x15c   :  { %1421 = vmatprep.subr.bf16.mxu1 %v1660_v0 }
 0x15f   :  { %1422 = vmatpush3.bf16.msra.mxu1 %v1550_v9  ;;  %v1572_v9 = vld [vmem:[#allocation6 + $0x88] sm:$0xff]  }
 0x160   :  { %1423 = vmatprep.subr.bf16.mxu1 %v1660_v0 }
 0x163   :  { %1424 = vmatpush3.bf16.msra.mxu1 %v1551_v10  ;;  %v1573_v10 = vld [vmem:[#allocation6 + $0x90] sm:$0xff]  }
 0x164   :  { %1425 = vmatprep.subr.bf16.mxu1 %v1660_v0 }
 0x167   :  { %1426 = vmatpush3.bf16.msra.mxu1 %v1552_v11  ;;  %v1574_v11 = vld [vmem:[#allocation6 + $0x98] sm:$0xff]  }
 0x168   :  { %1427 = vmatprep.subr.bf16.mxu1 %v1660_v0 }
 0x16b   :  { %1428 = vmatpush3.bf16.msra.mxu1 %v1553_v12  ;;  %v1575_v12 = vld [vmem:[#allocation6 + $0xa0] sm:$0xff]  }
 0x16c   :  { %1429 = vmatprep.subr.bf16.mxu1 %v1660_v0 }
 0x16f   :  { %1430 = vmatpush3.bf16.msra.mxu1 %v1554_v13  ;;  %v1576_v13 = vld [vmem:[#allocation6 + $0xa8] sm:$0xff]  }
 0x170   :  { %1455 = vmatprep.subr.bf16.mxu1 %v1660_v0 }
 0x205   :  { %v294_v44 = vpop.f32.mrb[0].mxu1 }
 0x206   :  { %v295_v45 = vadd.f32 %v1157_v43, %v294_v44  ;;  %v1353_v46 = vpop.f32.mrb[1].mxu1  ;;  %v1559_v44 = vld [vmem:[#allocation6 + $0x20] sm:$0xff]  }
 0x207   :  { %v297_v47 = vpop.f32.mrb[2].mxu1 }
 0x208   :  { %vm300_vm2 = vcmp.ge.f32.partialorder %v295_v45, 0.0  ;;  %v301_v48 = vmul.f32 0.1, %v295_v45  ;;  %v1354_v49 = vpop.f32.mrb[3].mxu1  ;;  %v1560_v47 = vld [vmem:[#allocation6 + $0x28] sm:$0xff]  }
 0x209   :  { %v1562_v49 = vld [vmem:[#allocation6 + $0x38] sm:$0xff]  }
 0x20a   :  { %v302_v50 = vsel %vm300_vm2, %v295_v45, %v301_v48  ;;  %v1561_v48 = vld [vmem:[#allocation6 + $0x30] sm:$0xff]  }
 0x20b   :  { %v303_v52 = vpack.c.bf16 %v302_v50, %v302_v50 }
 0x20d   :  { %1372 = vmatmul.mubr.bf16.vlgmr.msra.gmra.mrb[4].mxu0 %v303_v52 }
 0x20e   :  { %1396 = vmatpush3.bf16.msra.mxu0 %v1539_v51  ;;  %1411 = vmatprep.mubr.msk.bf16.mxu0 %vm1661_vm0, %v1660_v0 }
 0x20f   :  { %1397 = vmatprep.subr.bf16.mxu0 %v1660_v0 }
 0x212   :  { %1398 = vmatpush3.bf16.msra.mxu0 %v1540_v53 }
 0x213   :  { %1399 = vmatprep.subr.bf16.mxu0 %v1660_v0 }
 0x216   :  { %1400 = vmatpush3.bf16.msra.mxu0 %v1541_v54  ;;  %v1563_v54 = vld [vmem:[#allocation6 + $0x40] sm:$0xff]  }
 0x217   :  { %1401 = vmatprep.subr.bf16.mxu0 %v1660_v0 }
 0x21a   :  { %1402 = vmatpush3.bf16.msra.mxu0 %v1542_v55  ;;  %v1564_v55 = vld [vmem:[#allocation6 + $0x48] sm:$0xff]  }
 0x21b   :  { %1403 = vmatprep.subr.bf16.mxu0 %v1660_v0 }
 0x21e   :  { %1404 = vmatpush3.bf16.msra.mxu0 %v1543_v56  ;;  %v771_v56 = vunpack.c.l.bf16 %v1779_v15 }
 0x21f   :  { %1405 = vmatprep.subr.bf16.mxu0 %v1660_v0 }
 0x222   :  { %1406 = vmatpush3.bf16.msra.mxu0 %v1544_v57 }
 0x223   :  { %1407 = vmatprep.subr.bf16.mxu0 %v1660_v0 }
 0x225   :  { %v525_v60 = vpop.f32.mrb[4].mxu1 }
 0x226   :  { %v526_v61 = vadd.f32 %v1176_v59, %v525_v60  ;;  %v1393_v62 = vpop.f32.mrb[5].mxu1  ;;  %1408 = vmatpush3.bf16.msra.mxu0 %v1545_v58  ;;  %v1565_v59 = vld [vmem:[#allocation6 + $0x50] sm:$0xff]   ;;  %v772_v60 = vsel %vm71_vm5, %v771_v56, 0.0 }
 0x227   :  { %v528_v1 = vpop.f32.mrb[6].mxu1  ;;  %1409 = vmatprep.subr.bf16.mxu0 %v1660_v0 }
 0x228   :  { %vm531_vm3 = vcmp.ge.f32.partialorder %v526_v61, 0.0  ;;  %v532_v2 = vmul.f32 0.1, %v526_v61  ;;  %v1394_v3 = vpop.f32.mrb[7].mxu1 }
 0x22a   :  { %v533_v4 = vsel %vm531_vm3, %v526_v61, %v532_v2  ;;  %1410 = vmatpush3.bf16.msra.mxu0 %v1546_v63  ;;  %v1566_v2 = vld [vmem:[#allocation6 + $0x58] sm:$0xff]  }
 0x22b   :  { %v534_v5 = vpack.c.bf16 %v533_v4, %v533_v4  ;;  %1435 = vmatprep.subr.bf16.mxu0 %v1660_v0  ;;  %v1567_v4 = vld [vmem:[#allocation6 + $0x60] sm:$0xff]  }
 0x22d   :  { %1412 = vmatmul.mubr.bf16.vlgmr.msra.gmra.mrb[8].mxu0 %v534_v5  ;;  %v1568_v5 = vld [vmem:[#allocation6 + $0x68] sm:$0xff]  }
 0x22e   :  { %1451 = vmatprep.mubr.msk.bf16.mxu0 %vm1661_vm0, %v1660_v0  ;;  %1436 = vmatpush3.bf16.msra.mxu0 %v1555_v30 }
 0x22f   :  { %1437 = vmatprep.subr.bf16.mxu0 %v1660_v0 }
 0x232   :  { %1438 = vmatpush3.bf16.msra.mxu0 %v1556_v32 }
 0x233   :  { %1439 = vmatprep.subr.bf16.mxu0 %v1660_v0 }
 0x236   :  { %1440 = vmatpush3.bf16.msra.mxu0 %v1557_v35 }
 0x237   :  { %1441 = vmatprep.subr.bf16.mxu0 %v1660_v0 }
 0x23a   :  { %1442 = vmatpush3.bf16.msra.mxu0 %v1558_v42 }
 0x23b   :  { %1443 = vmatprep.subr.bf16.mxu0 %v1660_v0 }
 0x23e   :  { %1444 = vmatpush3.bf16.msra.mxu0 %v1559_v44 }
 0x23f   :  { %1445 = vmatprep.subr.bf16.mxu0 %v1660_v0 }
 0x242   :  { %1446 = vmatpush3.bf16.msra.mxu0 %v1560_v47 }
 0x243   :  { %1447 = vmatprep.subr.bf16.mxu0 %v1660_v0 }
 0x246   :  { %1448 = vmatpush3.bf16.msra.mxu0 %v1561_v48 }
 0x247   :  { %1449 = vmatprep.subr.bf16.mxu0 %v1660_v0 }
 0x24a   :  { %1450 = vmatpush3.bf16.msra.mxu0 %v1562_v49 }
 0x24b   :  { %1475 = vmatprep.subr.bf16.mxu0 %v1660_v0 }
 0x2e0   :  { %v411_v14 = vpop.f32.mrb[4].mxu0 }
 0x2e1   :  { %v1373_v16 = vpop.f32.mrb[5].mxu0  ;;  %v412_v29 = vadd.f32 %v1167_v28, %v411_v14  ;;  %v1205_v14 = vld [vmem:[%s1897_s6] ss:$0 sm:$0xff] }
 0x2e2   :  { %v414_v17 = vpop.f32.mrb[6].mxu0 }
 0x2e3   :  { %v1374_v18 = vpop.f32.mrb[7].mxu0  ;;  %v417_v31 = vmul.f32 1.442695, %v412_v29 }
 0x2e5   :  { %1579 = vpow2.f32 %v417_v31 }
 0x2ef   :  { %v1580_v45 = vpop.eup %1579 }
 0x2f0   :  { %v419_v46 = vsel %vm71_vm5, %v1580_v45, 0.0 }
 0x300   :  { %v642_v20 = vpop.f32.mrb[8].mxu0 }
 0x301   :  { %v643_v21 = vadd.f32 %v1186_v19, %v642_v20  ;;  %v1413_v22 = vpop.f32.mrb[9].mxu0 }
 0x302   :  { %v645_v23 = vpop.f32.mrb[10].mxu0 }
 0x303   :  { %vm648_vm4 = vcmp.ge.f32.partialorder %v643_v21, 0.0  ;;  %v649_v24 = vmul.f32 0.1, %v643_v21  ;;  %v1414_v25 = vpop.f32.mrb[11].mxu0 }
 0x304   :  { %v1578_v25 = vld [vmem:[#allocation6 + $0xb8] sm:$0xff]  }
 0x305   :  { %v650_v26 = vsel %vm648_vm4, %v643_v21, %v649_v24  ;;  %v1577_v24 = vld [vmem:[#allocation6 + $0xb0] sm:$0xff]  }
 0x306   :  { %v651_v27 = vpack.c.bf16 %v650_v26, %v650_v26  ;;  %v1215_v26 = vld [vmem:[%s1897_s6 + $0x1] ss:$0 sm:$0xff] }
 0x308   :  { %1432 = vmatmul.mubr.bf16.vlgmr.msra.gmra.mrb[8].mxu1 %v651_v27 }
 0x309   :  { %1471 = vmatprep.mubr.msk.bf16.mxu1 %vm1661_vm0, %v1660_v0  ;;  %1456 = vmatpush3.bf16.msra.mxu1 %v1563_v54 }
 0x30a   :  { %1457 = vmatprep.subr.bf16.mxu1 %v1660_v0 }
 0x30d   :  { %1458 = vmatpush3.bf16.msra.mxu1 %v1564_v55 }
 0x30e   :  { %1459 = vmatprep.subr.bf16.mxu1 %v1660_v0 }
 0x311   :  { %1460 = vmatpush3.bf16.msra.mxu1 %v1565_v59 }
 0x312   :  { %1461 = vmatprep.subr.bf16.mxu1 %v1660_v0 }
 0x315   :  { %1462 = vmatpush3.bf16.msra.mxu1 %v1566_v2 }
 0x316   :  { %1463 = vmatprep.subr.bf16.mxu1 %v1660_v0 }
 0x319   :  { %1464 = vmatpush3.bf16.msra.mxu1 %v1567_v4 }
 0x31a   :  { %1465 = vmatprep.subr.bf16.mxu1 %v1660_v0 }
 0x31d   :  { %1466 = vmatpush3.bf16.msra.mxu1 %v1568_v5 }
 0x31e   :  { %1467 = vmatprep.subr.bf16.mxu1 %v1660_v0 }
 0x321   :  { %1468 = vmatpush3.bf16.msra.mxu1 %v1569_v6 }
 0x322   :  { %1469 = vmatprep.subr.bf16.mxu1 %v1660_v0 }
 0x325   :  { %1470 = vmatpush3.bf16.msra.mxu1 %v1570_v7 }
 0x3db   :  { %v759_v36 = vpop.f32.mrb[8].mxu1 }
 0x3dc   :  { %v760_v37 = vadd.f32 %v1196_v34, %v759_v36  ;;  %v1433_v38 = vpop.f32.mrb[9].mxu1 }
 0x3dd   :  { %v762_v40 = vpop.f32.mrb[10].mxu1 }
 0x3de   :  { %766 = vrot.lane.b32.xlu0 %v760_v37, %s1662_s2  ;;  %v1434_v41 = vpop.f32.mrb[11].mxu1  ;;  %v765_v43 = vsel %vm71_vm5, %v760_v37, 0.0 }
 0x3e2   :  { %1128 = vrot.lane.b32.xlu0 %v765_v43, %s1663_s4 }
 0x3e6   :  { %1137 = vrot.lane.b32.xlu0 %v419_v46, %s1664_s25 }
 0x450   :  { %v767_v50 = vpop.permute.xlu0 %766 }
 0x451   :  { %v768_v51 = vmul.f32 1.442695, %v767_v50 }
 0x453   :  { %1581 = vpow2.f32 %v768_v51 }
 0x454   :  { %v1129_v36 = vpop.permute.xlu0 %1128 }
 0x458   :  { %v1138_v46 = vpop.permute.xlu0 %1137 }
 0x45d   :  { %v1582_v52 = vpop.eup %1581 }
 0x45e   :  { %v770_v53 = vsel %vm71_vm5, %v1582_v52, 0.0 }
 0x45f   :  { %1131 = vrot.lane.b32.xlu1 %v770_v53, %s1665_s26  ;;  %1583 = vrsqrt.f32 %v770_v53  ;;  %vm775_vm6 = vcmp.eq.f32.partialorder %v770_v53, inf  ;;  %v778_v61 = vand.u32 2147483648, %v770_v53  ;;  %vm777_vm7 = vcmp.eq.f32.partialorder %v770_v53, 0.0 }
 0x469   :  { %v1584_v57 = vpop.eup %1583 }
 0x46a   :  { %v774_v58 = vmul.f32 %v1584_v57, %v770_v53 }
 0x46c   :  { %v776_v62 = vsel %vm775_vm6, %v770_v53, %v774_v58 }
 0x46d   :  { %v779_v63 = vsel %vm777_vm7, %v778_v61, %v776_v62 }
 0x46e   :  { %v780_v1 = vmul.f32 %v779_v63, %v772_v60 }
 0x470   :  { %v781_v15 = vadd.f32 %v780_v1, %v765_v43 }
 0x472   :  { %1134 = vrot.lane.b32.xlu1 %v781_v15, %s1666_s28  ;;  %v782_v3 = vpack.c.bf16 %v781_v15, %v781_v15 }
 0x474   :  { %1452 = vmatmul.mubr.bf16.vlgmr.msra.gmra.mrb[12].mxu0 %v782_v3 }
 0x475   :  { %1491 = vmatprep.mubr.msk.bf16.mxu0 %vm1661_vm0, %v1660_v0  ;;  %1476 = vmatpush3.bf16.msra.mxu0 %v1571_v8 }
 0x476   :  { %1477 = vmatprep.subr.bf16.mxu0 %v1660_v0 }
 0x479   :  { %1478 = vmatpush3.bf16.msra.mxu0 %v1572_v9 }
 0x47a   :  { %1479 = vmatprep.subr.bf16.mxu0 %v1660_v0 }
 0x47d   :  { %1480 = vmatpush3.bf16.msra.mxu0 %v1573_v10 }
 0x47e   :  { %1481 = vmatprep.subr.bf16.mxu0 %v1660_v0 }
 0x481   :  { %1482 = vmatpush3.bf16.msra.mxu0 %v1574_v11 }
 0x482   :  { %1483 = vmatprep.subr.bf16.mxu0 %v1660_v0 }
 0x485   :  { %1484 = vmatpush3.bf16.msra.mxu0 %v1575_v12 }
 0x486   :  { %1485 = vmatprep.subr.bf16.mxu0 %v1660_v0 }
 0x489   :  { %1486 = vmatpush3.bf16.msra.mxu0 %v1576_v13 }
 0x48a   :  { %1487 = vmatprep.subr.bf16.mxu0 %v1660_v0 }
 0x48d   :  { %1488 = vmatpush3.bf16.msra.mxu0 %v1577_v24 }
 0x48e   :  { %1489 = vmatprep.subr.bf16.mxu0 %v1660_v0  ;;  %v1225_v0 = vld [vmem:[%s1897_s6 + $0x2] ss:$0 sm:$0xff] }
 0x491   :  { %1490 = vmatpush3.bf16.msra.mxu0 %v1578_v25 }
 0x4d1   :  { %v1132_v39 = vpop.permute.xlu1 %1131 }
 0x4e4   :  { %v1135_v44 = vpop.permute.xlu1 %1134 }
 0x547   :  { %v888_v16 = vpop.f32.mrb[12].mxu0 }
 0x548   :  { %v889_v17 = vadd.f32 %v1205_v14, %v888_v16  ;;  %v1453_v18 = vpop.f32.mrb[13].mxu0 }
 0x549   :  { %v891_v19 = vpop.f32.mrb[14].mxu0 }
 0x54a   :  { %vm894_vm8 = vcmp.ge.f32.partialorder %v889_v17, 0.0  ;;  %v895_v20 = vmul.f32 0.1, %v889_v17  ;;  %v1454_v21 = vpop.f32.mrb[15].mxu0 }
 0x54c   :  { %v896_v22 = vsel %vm894_vm8, %v889_v17, %v895_v20 }
 0x54d   :  { %v897_v23 = vpack.c.bf16 %v896_v22, %v896_v22 }
 0x54f   :  { %1472 = vmatmul.mubr.bf16.vlgmr.msra.gmra.mrb[12].mxu1 %v897_v23 }
 0x622   :  { %v1005_v27 = vpop.f32.mrb[12].mxu1 }
 0x623   :  { %v1006_v28 = vadd.f32 %v1215_v26, %v1005_v27  ;;  %v1473_v29 = vpop.f32.mrb[13].mxu1 }
 0x624   :  { %v1008_v30 = vpop.f32.mrb[14].mxu1 }
 0x625   :  { %vm1011_vm9 = vcmp.ge.f32.partialorder %v1006_v28, 0.0  ;;  %v1012_v31 = vmul.f32 0.1, %v1006_v28  ;;  %v1474_v32 = vpop.f32.mrb[15].mxu1 }
 0x627   :  { %v1013_v33 = vsel %vm1011_vm9, %v1006_v28, %v1012_v31 }
 0x628   :  { %v1014_v34 = vpack.c.bf16 %v1013_v33, %v1013_v33 }
 0x62a   :  { %1492 = vmatmul.mubr.bf16.vlgmr.msra.gmra.mrb[16].mxu0 %v1014_v34 }
 0x6fd   :  { %v1122_v35 = vpop.f32.mrb[16].mxu0 }
 0x6fe   :  { %v1123_v37 = vadd.f32 %v1225_v0, %v1122_v35  ;;  %v1493_v38 = vpop.f32.mrb[17].mxu0 }
 0x6ff   :  { %v1125_v40 = vpop.f32.mrb[18].mxu0 }
 0x700   :  { %v1130_v41 = vadd.f32 %v1129_v36, %v1123_v37  ;;  %v1494_v42 = vpop.f32.mrb[19].mxu0 }
 0x702   :  { %v1133_v43 = vadd.f32 %v1132_v39, %v1130_v41 }
 0x704   :  { %v1136_v45 = vadd.f32 %v1135_v44, %v1133_v43 }
 0x706   :  { %v1139_v47 = vadd.f32 %v1138_v46, %v1136_v45 }
 0x708   :  { %1140 = vst [vmem:[%s1898_s7] sm:$0xff] %v1139_v47 }
 0x709   :  { %1145 = vsyncpa [#allocation3], 1 }
 0x70a   :  { %1146 = vsyncpa [#allocation5], 1 }

</bundles_post_ra>
